<compile_context>
chip_gen: v6e
topology: v6e:2x2x1
jax: 0.10.0
libtpu: 0.0.40
codegen_flags: <defaults>
</compile_context>

<pallas_src>
import math
import functools

import jax
import jax.numpy as jnp
from jax import lax
from jax.experimental import pallas as pl
from jax.experimental.pallas import tpu as pltpu

# ---- config (mirrors config.hidden_size / config.transformer['num_heads']) ----
BATCH = 2
SEQ = 8
HIDDEN = 32
NUM_HEADS = 4
HEAD_DIM = HIDDEN // NUM_HEADS


def _make_kernel(batch_block):
    """Build a kernel processing `batch_block` batch elements per grid step."""

    def attention_kernel(x_ref, wqkv_ref, bqkv_ref, wo_ref, bo_ref, o_ref):
        # x_ref block: (batch_block*SEQ, HIDDEN), bf16; batch flattened into rows.
        x = x_ref[...]

        # Fused QKV projection: one bf16 MXU matmul with f32 accumulation.
        # 1/sqrt(head_dim) already folded into the Q columns / bias.
        qkv = jnp.dot(x, wqkv_ref[...], preferred_element_type=jnp.float32)
        qkv = qkv + bqkv_ref[...].astype(jnp.float32)

        # Small weights upcast once; reused by every head.
        wo = wo_ref[...].astype(jnp.float32)          # (H, H)
        bias_o = bo_ref[...].astype(jnp.float32)      # (1, H)

        # Statically unrolled per-(batch, head) attention.  The output
        # projection is folded into the head loop and accumulated in
        # registers; no VMEM round-trip of the context.
        for b in range(batch_block):
            row_sl = slice(b * SEQ, (b + 1) * SEQ)
            qkv_b = qkv[row_sl, :]                    # hoisted once per batch elem
            out_b = None
            for h in range(NUM_HEADS):
                c_sl = slice(h * HEAD_DIM, (h + 1) * HEAD_DIM)
                qh = qkv_b[:, h * HEAD_DIM:(h + 1) * HEAD_DIM]
                kh = qkv_b[:, HIDDEN + h * HEAD_DIM:HIDDEN + (h + 1) * HEAD_DIM]
                vh = qkv_b[:, 2 * HIDDEN + h * HEAD_DIM:2 * HIDDEN + (h + 1) * HEAD_DIM]

                # q @ k^T, contracting last dims (no explicit transpose).
                s = lax.dot_general(qh, kh, (((1,), (1,)), ((), ())),
                                    preferred_element_type=jnp.float32)  # (S, S)

                # Numerically stable softmax, all f32; reciprocal on the EUP slot.
                s = s - jnp.max(s, axis=-1, keepdims=True)
                p = jnp.exp(s)
                p = p * pl.reciprocal(jnp.sum(p, axis=-1, keepdims=True), approx=True)

                ctx_h = jnp.dot(p, vh, preferred_element_type=jnp.float32)   # (S, hd)
                # Fold output projection: this head's contribution via Wo's
                # static row slice (cheap sublane slice).
                contrib = jnp.dot(ctx_h, wo[c_sl, :],
                                  preferred_element_type=jnp.float32)        # (S, H)
                out_b = contrib if out_b is None else out_b + contrib

            # Single full-width store per batch element.
            o_ref[row_sl, :] = (out_b + bias_o).astype(o_ref.dtype)

    return attention_kernel


def _choose_batch_block(B, S):
    """Shard the batch across TensorCores only when the per-core tile is big
    enough to be compute bound; otherwise collapse the grid entirely."""
    if B % 2 == 0 and (B // 2) * S >= 128:
        return B // 2
    return B


@functools.partial(jax.jit, static_argnames=("batch_block",))
def attention_forward(x, wqkv, bqkv, wo, bo, *, batch_block):
    B, S, H = x.shape
    assert B % batch_block == 0, "batch_block must divide the batch size"
    # bf16 activations into the kernel; f32 result out.
    x_flat = x.astype(jnp.bfloat16).reshape(B * S, H)
    rows = batch_block * S

    # Advisory cost estimate so XLA schedules around this tiny custom call.
    flops = (2 * B * S * H * 3 * H                       # fused QKV projection
             + B * NUM_HEADS * 4 * S * S * HEAD_DIM      # scores + context
             + 2 * B * S * H * H)                        # output projection
    transcendentals = B * NUM_HEADS * S * S
    bytes_accessed = (2 * (B * S * H + H * 3 * H + 3 * H + H * H + H)   # bf16 in
                      + 4 * B * S * H)                                   # f32 out

    # TODO(synk): if SEQ/HIDDEN/B are scaled up, re-derive per-generation
    # tiling (>=128-row M tiles, 128-lane last dims, explicit vmem_limit_bytes)
    # instead of these full-array BlockSpecs.
    out_flat = pl.pallas_call(
        _make_kernel(batch_block),
        out_shape=jax.ShapeDtypeStruct((B * S, H), jnp.float32),
        grid_spec=pltpu.PrefetchScalarGridSpec(
            num_scalar_prefetch=0,
            grid=(B // batch_block,),
            in_specs=[
                pl.BlockSpec((rows, H), lambda i: (i, 0)),       # x (flattened)
                pl.BlockSpec((H, 3 * H), lambda i: (0, 0)),      # fused Wqkv
                pl.BlockSpec((1, 3 * H), lambda i: (0, 0)),      # fused bqkv
                pl.BlockSpec((H, H), lambda i: (0, 0)),          # Wo
                pl.BlockSpec((1, H), lambda i: (0, 0)),          # bo
            ],
            out_specs=pl.BlockSpec((rows, H), lambda i: (i, 0)),
        ),
        compiler_params=pltpu.CompilerParams(
            dimension_semantics=("parallel",)),
        cost_estimate=pl.CostEstimate(flops=flops,
                                      transcendentals=transcendentals,
                                      bytes_accessed=bytes_accessed),
    )(x_flat, wqkv, bqkv, wo, bo)

    return out_flat.reshape(B, S, H)


def prepare_params(wq, bq, wk, bk, wv, bv, wo, bo):
    """One-time weight transform: fuse QKV, fold the attention scale into Q,
    and cast everything to bf16 for HBM/VMEM traffic + native MXU rate."""
    scale = 1.0 / math.sqrt(HEAD_DIM)
    wqkv = jnp.concatenate([wq * scale, wk, wv], axis=1).astype(jnp.bfloat16)  # (H, 3H)
    bqkv = jnp.concatenate([bq * scale, bk, bv], axis=1).astype(jnp.bfloat16)  # (1, 3H)
    return wqkv, bqkv, wo.astype(jnp.bfloat16), bo.astype(jnp.bfloat16)


def reference_forward(x, wq, bq, wk, bk, wv, bv, wo, bo):
    """Pure-JAX f32 reference mirroring the PyTorch forward (eval mode)."""
    B, S, H = x.shape
    q = x @ wq + bq
    k = x @ wk + bk
    v = x @ wv + bv

    def split_heads(t):
        return t.reshape(B, S, NUM_HEADS, HEAD_DIM).transpose(0, 2, 1, 3)

    qh, kh, vh = split_heads(q), split_heads(k), split_heads(v)
    scores = jnp.einsum("bhqd,bhkd->bhqk", qh, kh) / math.sqrt(HEAD_DIM)
    probs = jax.nn.softmax(scores, axis=-1)
    ctx = jnp.einsum("bhqk,bhkd->bhqd", probs, vh)
    ctx = ctx.transpose(0, 2, 1, 3).reshape(B, S, H)
    return ctx @ wo + bo


def _bf16_round(t):
    """bf16-quantize-then-upcast, to build an apples-to-apples f32 reference."""
    return t.astype(jnp.bfloat16).astype(jnp.float32)


if __name__ == "__main__":
    key = jax.random.PRNGKey(0)
    keys = jax.random.split(key, 9)

    # Deterministic synthetic parameters (nn.Linear(H, H) shapes).
    # Weights stored [in, out] (i.e. already transposed from PyTorch's [out, in]).
    def w(k):
        return jax.random.normal(k, (HIDDEN, HIDDEN), jnp.float32) * 0.02

    def b(k):
        return jax.random.normal(k, (1, HIDDEN), jnp.float32) * 0.02

    wq, wk_, wv, wo = w(keys[0]), w(keys[1]), w(keys[2]), w(keys[3])
    bq, bk_, bv, bo = b(keys[4]), b(keys[5]), b(keys[6]), b(keys[7])

    x = jax.random.normal(keys[8], (BATCH, SEQ, HIDDEN), jnp.float32)

    # One-time fused/scaled/bf16 weight prep (outside jit / outside the kernel).
    wqkv, bqkv, wo_bf, bo_bf = prepare_params(wq, bq, wk_, bk_, wv, bv, wo, bo)

    # Collapse the grid at these tiny shapes (megacore split only pays off once
    # the per-core tile is compute bound).
    batch_block = _choose_batch_block(BATCH, SEQ)

    out = attention_forward(x, wqkv, bqkv, wo_bf, bo_bf, batch_block=batch_block)
    out = jax.block_until_ready(out)

    # Reference on the same bf16-rounded inputs/weights (isolates kernel math
    # from the intentional bf16 quantization); approx reciprocal in the softmax
    # sets the ~2e-3 tolerance.
    ref = reference_forward(_bf16_round(x),
                            _bf16_round(wq), _bf16_round(bq),
                            _bf16_round(wk_), _bf16_round(bk_),
                            _bf16_round(wv), _bf16_round(bv),
                            _bf16_round(wo), _bf16_round(bo))
    assert out.shape == (BATCH, SEQ, HIDDEN)
    assert jnp.allclose(out, ref, atol=2e-3, rtol=2e-3), "mismatch vs reference"

    print("KERNEL_OK")
</pallas_src>

<mosaic_0001>
module attributes {stable_mosaic.version = 11 : i64} {
  func.func @attention_kernel(%arg0: i32, %arg1: memref<16x32xbf16, #tpu.memory_space<vmem>>, %arg2: memref<32x96xbf16, #tpu.memory_space<vmem>>, %arg3: memref<1x96xbf16, #tpu.memory_space<vmem>>, %arg4: memref<32x32xbf16, #tpu.memory_space<vmem>>, %arg5: memref<1x32xbf16, #tpu.memory_space<vmem>>, %arg6: memref<16x32xf32, #tpu.memory_space<vmem>>) attributes {dimension_semantics = [#tpu.dimension_semantics<parallel>], iteration_bounds = array<i64: 1>, scalar_prefetch = 0 : i64, scratch_operands = 0 : i64, tpu.core_type = #tpu.core_type<tc>, window_params = [{transform_indices = @transform_0, window_bounds = array<i64: 16, 32>}, {pipeline_mode = #tpu.pipeline_mode<synchronous>, transform_indices = @transform_1, window_bounds = array<i64: 32, 96>}, {pipeline_mode = #tpu.pipeline_mode<synchronous>, transform_indices = @transform_2, window_bounds = array<i64: 1, 96>}, {pipeline_mode = #tpu.pipeline_mode<synchronous>, transform_indices = @transform_3, window_bounds = array<i64: 32, 32>}, {pipeline_mode = #tpu.pipeline_mode<synchronous>, transform_indices = @transform_4, window_bounds = array<i64: 1, 32>}, {transform_indices = @transform_5, window_bounds = array<i64: 16, 32>}]} {
    %c0 = arith.constant 0 : index
    %c0_0 = arith.constant 0 : index
    %0 = vector.load %arg1[%c0, %c0_0] : memref<16x32xbf16, #tpu.memory_space<vmem>>, vector<16x32xbf16>
    %c0_1 = arith.constant 0 : index
    %c0_2 = arith.constant 0 : index
    %1 = vector.load %arg2[%c0_1, %c0_2] : memref<32x96xbf16, #tpu.memory_space<vmem>>, vector<32x96xbf16>
    %cst = arith.constant dense<0.000000e+00> : vector<16x96xf32>
    %2 = tpu.matmul %0, %1, %cst {dimension_numbers = #tpu.dot_dimension_numbers<[1], [0], [0], [1], [0, 0, 1, 1], [], []>} : vector<16x32xbf16>, vector<32x96xbf16>, vector<16x96xf32> -> vector<16x96xf32>
    %c0_3 = arith.constant 0 : index
    %c0_4 = arith.constant 0 : index
    %3 = vector.load %arg3[%c0_3, %c0_4] : memref<1x96xbf16, #tpu.memory_space<vmem>>, vector<1x96xbf16>
    %4 = arith.extf %3 : vector<1x96xbf16> to vector<1x96xf32>
    %5 = vector.broadcast %4 : vector<1x96xf32> to vector<16x96xf32>
    %6 = arith.addf %2, %5 : vector<16x96xf32>
    %c0_5 = arith.constant 0 : index
    %c0_6 = arith.constant 0 : index
    %7 = vector.load %arg4[%c0_5, %c0_6] : memref<32x32xbf16, #tpu.memory_space<vmem>>, vector<32x32xbf16>
    %8 = arith.extf %7 : vector<32x32xbf16> to vector<32x32xf32>
    %c0_7 = arith.constant 0 : index
    %c0_8 = arith.constant 0 : index
    %9 = vector.load %arg5[%c0_7, %c0_8] : memref<1x32xbf16, #tpu.memory_space<vmem>>, vector<1x32xbf16>
    %10 = arith.extf %9 : vector<1x32xbf16> to vector<1x32xf32>
    %11 = vector.extract_strided_slice %6 {offsets = [0, 0], sizes = [8, 96], strides = [1, 1]} : vector<16x96xf32> to vector<8x96xf32>
    %12 = vector.extract_strided_slice %11 {offsets = [0, 0], sizes = [8, 8], strides = [1, 1]} : vector<8x96xf32> to vector<8x8xf32>
    %13 = vector.extract_strided_slice %11 {offsets = [0, 32], sizes = [8, 8], strides = [1, 1]} : vector<8x96xf32> to vector<8x8xf32>
    %14 = vector.extract_strided_slice %11 {offsets = [0, 64], sizes = [8, 8], strides = [1, 1]} : vector<8x96xf32> to vector<8x8xf32>
    %cst_9 = arith.constant dense<0.000000e+00> : vector<8x8xf32>
    %15 = tpu.matmul %12, %13, %cst_9 {dimension_numbers = #tpu.dot_dimension_numbers<[1], [1], [0], [0], [0, 0, 1, 0], [], []>} : vector<8x8xf32>, vector<8x8xf32>, vector<8x8xf32> -> vector<8x8xf32>
    %cst_10 = arith.constant dense<0xFF800000> : vector<8xf32>
    %16 = vector.multi_reduction <maximumf>, %15, %cst_10 [1] : vector<8x8xf32> to vector<8xf32>
    %17 = vector.shape_cast %16 : vector<8xf32> to vector<8x1xf32>
    %18 = vector.broadcast %17 : vector<8x1xf32> to vector<8x8xf32>
    %19 = arith.subf %15, %18 : vector<8x8xf32>
    %20 = math.exp %19 : vector<8x8xf32>
    %cst_11 = arith.constant dense<0.000000e+00> : vector<8xf32>
    %21 = vector.multi_reduction <add>, %20, %cst_11 [1] : vector<8x8xf32> to vector<8xf32>
    %22 = vector.shape_cast %21 : vector<8xf32> to vector<8x1xf32>
    %23 = tpu.reciprocal %22 {approx = true} : vector<8x1xf32> -> vector<8x1xf32>
    %24 = vector.broadcast %23 : vector<8x1xf32> to vector<8x8xf32>
    %25 = arith.mulf %20, %24 : vector<8x8xf32>
    %cst_12 = arith.constant dense<0.000000e+00> : vector<8x8xf32>
    %26 = tpu.matmul %25, %14, %cst_12 {dimension_numbers = #tpu.dot_dimension_numbers<[1], [0], [0], [1], [0, 0, 1, 1], [], []>} : vector<8x8xf32>, vector<8x8xf32>, vector<8x8xf32> -> vector<8x8xf32>
    %27 = vector.extract_strided_slice %8 {offsets = [0, 0], sizes = [8, 32], strides = [1, 1]} : vector<32x32xf32> to vector<8x32xf32>
    %cst_13 = arith.constant dense<0.000000e+00> : vector<8x32xf32>
    %28 = tpu.matmul %26, %27, %cst_13 {dimension_numbers = #tpu.dot_dimension_numbers<[1], [0], [0], [1], [0, 0, 1, 1], [], []>} : vector<8x8xf32>, vector<8x32xf32>, vector<8x32xf32> -> vector<8x32xf32>
    %29 = vector.extract_strided_slice %11 {offsets = [0, 8], sizes = [8, 8], strides = [1, 1]} : vector<8x96xf32> to vector<8x8xf32>
    %30 = vector.extract_strided_slice %11 {offsets = [0, 40], sizes = [8, 8], strides = [1, 1]} : vector<8x96xf32> to vector<8x8xf32>
    %31 = vector.extract_strided_slice %11 {offsets = [0, 72], sizes = [8, 8], strides = [1, 1]} : vector<8x96xf32> to vector<8x8xf32>
    %cst_14 = arith.constant dense<0.000000e+00> : vector<8x8xf32>
    %32 = tpu.matmul %29, %30, %cst_14 {dimension_numbers = #tpu.dot_dimension_numbers<[1], [1], [0], [0], [0, 0, 1, 0], [], []>} : vector<8x8xf32>, vector<8x8xf32>, vector<8x8xf32> -> vector<8x8xf32>
    %cst_15 = arith.constant dense<0xFF800000> : vector<8xf32>
    %33 = vector.multi_reduction <maximumf>, %32, %cst_15 [1] : vector<8x8xf32> to vector<8xf32>
    %34 = vector.shape_cast %33 : vector<8xf32> to vector<8x1xf32>
    %35 = vector.broadcast %34 : vector<8x1xf32> to vector<8x8xf32>
    %36 = arith.subf %32, %35 : vector<8x8xf32>
    %37 = math.exp %36 : vector<8x8xf32>
    %cst_16 = arith.constant dense<0.000000e+00> : vector<8xf32>
    %38 = vector.multi_reduction <add>, %37, %cst_16 [1] : vector<8x8xf32> to vector<8xf32>
    %39 = vector.shape_cast %38 : vector<8xf32> to vector<8x1xf32>
    %40 = tpu.reciprocal %39 {approx = true} : vector<8x1xf32> -> vector<8x1xf32>
    %41 = vector.broadcast %40 : vector<8x1xf32> to vector<8x8xf32>
    %42 = arith.mulf %37, %41 : vector<8x8xf32>
    %cst_17 = arith.constant dense<0.000000e+00> : vector<8x8xf32>
    %43 = tpu.matmul %42, %31, %cst_17 {dimension_numbers = #tpu.dot_dimension_numbers<[1], [0], [0], [1], [0, 0, 1, 1], [], []>} : vector<8x8xf32>, vector<8x8xf32>, vector<8x8xf32> -> vector<8x8xf32>
    %44 = vector.extract_strided_slice %8 {offsets = [8, 0], sizes = [8, 32], strides = [1, 1]} : vector<32x32xf32> to vector<8x32xf32>
    %cst_18 = arith.constant dense<0.000000e+00> : vector<8x32xf32>
    %45 = tpu.matmul %43, %44, %cst_18 {dimension_numbers = #tpu.dot_dimension_numbers<[1], [0], [0], [1], [0, 0, 1, 1], [], []>} : vector<8x8xf32>, vector<8x32xf32>, vector<8x32xf32> -> vector<8x32xf32>
    %46 = arith.addf %28, %45 : vector<8x32xf32>
    %47 = vector.extract_strided_slice %11 {offsets = [0, 16], sizes = [8, 8], strides = [1, 1]} : vector<8x96xf32> to vector<8x8xf32>
    %48 = vector.extract_strided_slice %11 {offsets = [0, 48], sizes = [8, 8], strides = [1, 1]} : vector<8x96xf32> to vector<8x8xf32>
    %49 = vector.extract_strided_slice %11 {offsets = [0, 80], sizes = [8, 8], strides = [1, 1]} : vector<8x96xf32> to vector<8x8xf32>
    %cst_19 = arith.constant dense<0.000000e+00> : vector<8x8xf32>
    %50 = tpu.matmul %47, %48, %cst_19 {dimension_numbers = #tpu.dot_dimension_numbers<[1], [1], [0], [0], [0, 0, 1, 0], [], []>} : vector<8x8xf32>, vector<8x8xf32>, vector<8x8xf32> -> vector<8x8xf32>
    %cst_20 = arith.constant dense<0xFF800000> : vector<8xf32>
    %51 = vector.multi_reduction <maximumf>, %50, %cst_20 [1] : vector<8x8xf32> to vector<8xf32>
    %52 = vector.shape_cast %51 : vector<8xf32> to vector<8x1xf32>
    %53 = vector.broadcast %52 : vector<8x1xf32> to vector<8x8xf32>
    %54 = arith.subf %50, %53 : vector<8x8xf32>
    %55 = math.exp %54 : vector<8x8xf32>
    %cst_21 = arith.constant dense<0.000000e+00> : vector<8xf32>
    %56 = vector.multi_reduction <add>, %55, %cst_21 [1] : vector<8x8xf32> to vector<8xf32>
    %57 = vector.shape_cast %56 : vector<8xf32> to vector<8x1xf32>
    %58 = tpu.reciprocal %57 {approx = true} : vector<8x1xf32> -> vector<8x1xf32>
    %59 = vector.broadcast %58 : vector<8x1xf32> to vector<8x8xf32>
    %60 = arith.mulf %55, %59 : vector<8x8xf32>
    %cst_22 = arith.constant dense<0.000000e+00> : vector<8x8xf32>
    %61 = tpu.matmul %60, %49, %cst_22 {dimension_numbers = #tpu.dot_dimension_numbers<[1], [0], [0], [1], [0, 0, 1, 1], [], []>} : vector<8x8xf32>, vector<8x8xf32>, vector<8x8xf32> -> vector<8x8xf32>
    %62 = vector.extract_strided_slice %8 {offsets = [16, 0], sizes = [8, 32], strides = [1, 1]} : vector<32x32xf32> to vector<8x32xf32>
    %cst_23 = arith.constant dense<0.000000e+00> : vector<8x32xf32>
    %63 = tpu.matmul %61, %62, %cst_23 {dimension_numbers = #tpu.dot_dimension_numbers<[1], [0], [0], [1], [0, 0, 1, 1], [], []>} : vector<8x8xf32>, vector<8x32xf32>, vector<8x32xf32> -> vector<8x32xf32>
    %64 = arith.addf %46, %63 : vector<8x32xf32>
    %65 = vector.extract_strided_slice %11 {offsets = [0, 24], sizes = [8, 8], strides = [1, 1]} : vector<8x96xf32> to vector<8x8xf32>
    %66 = vector.extract_strided_slice %11 {offsets = [0, 56], sizes = [8, 8], strides = [1, 1]} : vector<8x96xf32> to vector<8x8xf32>
    %67 = vector.extract_strided_slice %11 {offsets = [0, 88], sizes = [8, 8], strides = [1, 1]} : vector<8x96xf32> to vector<8x8xf32>
    %cst_24 = arith.constant dense<0.000000e+00> : vector<8x8xf32>
    %68 = tpu.matmul %65, %66, %cst_24 {dimension_numbers = #tpu.dot_dimension_numbers<[1], [1], [0], [0], [0, 0, 1, 0], [], []>} : vector<8x8xf32>, vector<8x8xf32>, vector<8x8xf32> -> vector<8x8xf32>
    %cst_25 = arith.constant dense<0xFF800000> : vector<8xf32>
    %69 = vector.multi_reduction <maximumf>, %68, %cst_25 [1] : vector<8x8xf32> to vector<8xf32>
    %70 = vector.shape_cast %69 : vector<8xf32> to vector<8x1xf32>
    %71 = vector.broadcast %70 : vector<8x1xf32> to vector<8x8xf32>
    %72 = arith.subf %68, %71 : vector<8x8xf32>
    %73 = math.exp %72 : vector<8x8xf32>
    %cst_26 = arith.constant dense<0.000000e+00> : vector<8xf32>
    %74 = vector.multi_reduction <add>, %73, %cst_26 [1] : vector<8x8xf32> to vector<8xf32>
    %75 = vector.shape_cast %74 : vector<8xf32> to vector<8x1xf32>
    %76 = tpu.reciprocal %75 {approx = true} : vector<8x1xf32> -> vector<8x1xf32>
    %77 = vector.broadcast %76 : vector<8x1xf32> to vector<8x8xf32>
    %78 = arith.mulf %73, %77 : vector<8x8xf32>
    %cst_27 = arith.constant dense<0.000000e+00> : vector<8x8xf32>
    %79 = tpu.matmul %78, %67, %cst_27 {dimension_numbers = #tpu.dot_dimension_numbers<[1], [0], [0], [1], [0, 0, 1, 1], [], []>} : vector<8x8xf32>, vector<8x8xf32>, vector<8x8xf32> -> vector<8x8xf32>
    %80 = vector.extract_strided_slice %8 {offsets = [24, 0], sizes = [8, 32], strides = [1, 1]} : vector<32x32xf32> to vector<8x32xf32>
    %cst_28 = arith.constant dense<0.000000e+00> : vector<8x32xf32>
    %81 = tpu.matmul %79, %80, %cst_28 {dimension_numbers = #tpu.dot_dimension_numbers<[1], [0], [0], [1], [0, 0, 1, 1], [], []>} : vector<8x8xf32>, vector<8x32xf32>, vector<8x32xf32> -> vector<8x32xf32>
    %82 = arith.addf %64, %81 : vector<8x32xf32>
    %83 = vector.broadcast %10 : vector<1x32xf32> to vector<8x32xf32>
    %84 = arith.addf %82, %83 : vector<8x32xf32>
    %c0_29 = arith.constant 0 : index
    %c0_30 = arith.constant 0 : index
    %85 = vector.load %arg6[%c0_29, %c0_30] : memref<16x32xf32, #tpu.memory_space<vmem>>, vector<8x32xf32>
    tpu.vector_store %arg6[%c0_29, %c0_30], %84 {strides = array<i32>} : memref<16x32xf32, #tpu.memory_space<vmem>>, vector<8x32xf32>,
    %86 = vector.extract_strided_slice %6 {offsets = [8, 0], sizes = [8, 96], strides = [1, 1]} : vector<16x96xf32> to vector<8x96xf32>
    %87 = vector.extract_strided_slice %86 {offsets = [0, 0], sizes = [8, 8], strides = [1, 1]} : vector<8x96xf32> to vector<8x8xf32>
    %88 = vector.extract_strided_slice %86 {offsets = [0, 32], sizes = [8, 8], strides = [1, 1]} : vector<8x96xf32> to vector<8x8xf32>
    %89 = vector.extract_strided_slice %86 {offsets = [0, 64], sizes = [8, 8], strides = [1, 1]} : vector<8x96xf32> to vector<8x8xf32>
    %cst_31 = arith.constant dense<0.000000e+00> : vector<8x8xf32>
    %90 = tpu.matmul %87, %88, %cst_31 {dimension_numbers = #tpu.dot_dimension_numbers<[1], [1], [0], [0], [0, 0, 1, 0], [], []>} : vector<8x8xf32>, vector<8x8xf32>, vector<8x8xf32> -> vector<8x8xf32>
    %cst_32 = arith.constant dense<0xFF800000> : vector<8xf32>
    %91 = vector.multi_reduction <maximumf>, %90, %cst_32 [1] : vector<8x8xf32> to vector<8xf32>
    %92 = vector.shape_cast %91 : vector<8xf32> to vector<8x1xf32>
    %93 = vector.broadcast %92 : vector<8x1xf32> to vector<8x8xf32>
    %94 = arith.subf %90, %93 : vector<8x8xf32>
    %95 = math.exp %94 : vector<8x8xf32>
    %cst_33 = arith.constant dense<0.000000e+00> : vector<8xf32>
    %96 = vector.multi_reduction <add>, %95, %cst_33 [1] : vector<8x8xf32> to vector<8xf32>
    %97 = vector.shape_cast %96 : vector<8xf32> to vector<8x1xf32>
    %98 = tpu.reciprocal %97 {approx = true} : vector<8x1xf32> -> vector<8x1xf32>
    %99 = vector.broadcast %98 : vector<8x1xf32> to vector<8x8xf32>
    %100 = arith.mulf %95, %99 : vector<8x8xf32>
    %cst_34 = arith.constant dense<0.000000e+00> : vector<8x8xf32>
    %101 = tpu.matmul %100, %89, %cst_34 {dimension_numbers = #tpu.dot_dimension_numbers<[1], [0], [0], [1], [0, 0, 1, 1], [], []>} : vector<8x8xf32>, vector<8x8xf32>, vector<8x8xf32> -> vector<8x8xf32>
    %102 = vector.extract_strided_slice %8 {offsets = [0, 0], sizes = [8, 32], strides = [1, 1]} : vector<32x32xf32> to vector<8x32xf32>
    %cst_35 = arith.constant dense<0.000000e+00> : vector<8x32xf32>
    %103 = tpu.matmul %101, %102, %cst_35 {dimension_numbers = #tpu.dot_dimension_numbers<[1], [0], [0], [1], [0, 0, 1, 1], [], []>} : vector<8x8xf32>, vector<8x32xf32>, vector<8x32xf32> -> vector<8x32xf32>
    %104 = vector.extract_strided_slice %86 {offsets = [0, 8], sizes = [8, 8], strides = [1, 1]} : vector<8x96xf32> to vector<8x8xf32>
    %105 = vector.extract_strided_slice %86 {offsets = [0, 40], sizes = [8, 8], strides = [1, 1]} : vector<8x96xf32> to vector<8x8xf32>
    %106 = vector.extract_strided_slice %86 {offsets = [0, 72], sizes = [8, 8], strides = [1, 1]} : vector<8x96xf32> to vector<8x8xf32>
    %cst_36 = arith.constant dense<0.000000e+00> : vector<8x8xf32>
    %107 = tpu.matmul %104, %105, %cst_36 {dimension_numbers = #tpu.dot_dimension_numbers<[1], [1], [0], [0], [0, 0, 1, 0], [], []>} : vector<8x8xf32>, vector<8x8xf32>, vector<8x8xf32> -> vector<8x8xf32>
    %cst_37 = arith.constant dense<0xFF800000> : vector<8xf32>
    %108 = vector.multi_reduction <maximumf>, %107, %cst_37 [1] : vector<8x8xf32> to vector<8xf32>
    %109 = vector.shape_cast %108 : vector<8xf32> to vector<8x1xf32>
    %110 = vector.broadcast %109 : vector<8x1xf32> to vector<8x8xf32>
    %111 = arith.subf %107, %110 : vector<8x8xf32>
    %112 = math.exp %111 : vector<8x8xf32>
    %cst_38 = arith.constant dense<0.000000e+00> : vector<8xf32>
    %113 = vector.multi_reduction <add>, %112, %cst_38 [1] : vector<8x8xf32> to vector<8xf32>
    %114 = vector.shape_cast %113 : vector<8xf32> to vector<8x1xf32>
    %115 = tpu.reciprocal %114 {approx = true} : vector<8x1xf32> -> vector<8x1xf32>
    %116 = vector.broadcast %115 : vector<8x1xf32> to vector<8x8xf32>
    %117 = arith.mulf %112, %116 : vector<8x8xf32>
    %cst_39 = arith.constant dense<0.000000e+00> : vector<8x8xf32>
    %118 = tpu.matmul %117, %106, %cst_39 {dimension_numbers = #tpu.dot_dimension_numbers<[1], [0], [0], [1], [0, 0, 1, 1], [], []>} : vector<8x8xf32>, vector<8x8xf32>, vector<8x8xf32> -> vector<8x8xf32>
    %119 = vector.extract_strided_slice %8 {offsets = [8, 0], sizes = [8, 32], strides = [1, 1]} : vector<32x32xf32> to vector<8x32xf32>
    %cst_40 = arith.constant dense<0.000000e+00> : vector<8x32xf32>
    %120 = tpu.matmul %118, %119, %cst_40 {dimension_numbers = #tpu.dot_dimension_numbers<[1], [0], [0], [1], [0, 0, 1, 1], [], []>} : vector<8x8xf32>, vector<8x32xf32>, vector<8x32xf32> -> vector<8x32xf32>
    %121 = arith.addf %103, %120 : vector<8x32xf32>
    %122 = vector.extract_strided_slice %86 {offsets = [0, 16], sizes = [8, 8], strides = [1, 1]} : vector<8x96xf32> to vector<8x8xf32>
    %123 = vector.extract_strided_slice %86 {offsets = [0, 48], sizes = [8, 8], strides = [1, 1]} : vector<8x96xf32> to vector<8x8xf32>
    %124 = vector.extract_strided_slice %86 {offsets = [0, 80], sizes = [8, 8], strides = [1, 1]} : vector<8x96xf32> to vector<8x8xf32>
    %cst_41 = arith.constant dense<0.000000e+00> : vector<8x8xf32>
    %125 = tpu.matmul %122, %123, %cst_41 {dimension_numbers = #tpu.dot_dimension_numbers<[1], [1], [0], [0], [0, 0, 1, 0], [], []>} : vector<8x8xf32>, vector<8x8xf32>, vector<8x8xf32> -> vector<8x8xf32>
    %cst_42 = arith.constant dense<0xFF800000> : vector<8xf32>
    %126 = vector.multi_reduction <maximumf>, %125, %cst_42 [1] : vector<8x8xf32> to vector<8xf32>
    %127 = vector.shape_cast %126 : vector<8xf32> to vector<8x1xf32>
    %128 = vector.broadcast %127 : vector<8x1xf32> to vector<8x8xf32>
    %129 = arith.subf %125, %128 : vector<8x8xf32>
    %130 = math.exp %129 : vector<8x8xf32>
    %cst_43 = arith.constant dense<0.000000e+00> : vector<8xf32>
    %131 = vector.multi_reduction <add>, %130, %cst_43 [1] : vector<8x8xf32> to vector<8xf32>
    %132 = vector.shape_cast %131 : vector<8xf32> to vector<8x1xf32>
    %133 = tpu.reciprocal %132 {approx = true} : vector<8x1xf32> -> vector<8x1xf32>
    %134 = vector.broadcast %133 : vector<8x1xf32> to vector<8x8xf32>
    %135 = arith.mulf %130, %134 : vector<8x8xf32>
    %cst_44 = arith.constant dense<0.000000e+00> : vector<8x8xf32>
    %136 = tpu.matmul %135, %124, %cst_44 {dimension_numbers = #tpu.dot_dimension_numbers<[1], [0], [0], [1], [0, 0, 1, 1], [], []>} : vector<8x8xf32>, vector<8x8xf32>, vector<8x8xf32> -> vector<8x8xf32>
    %137 = vector.extract_strided_slice %8 {offsets = [16, 0], sizes = [8, 32], strides = [1, 1]} : vector<32x32xf32> to vector<8x32xf32>
    %cst_45 = arith.constant dense<0.000000e+00> : vector<8x32xf32>
    %138 = tpu.matmul %136, %137, %cst_45 {dimension_numbers = #tpu.dot_dimension_numbers<[1], [0], [0], [1], [0, 0, 1, 1], [], []>} : vector<8x8xf32>, vector<8x32xf32>, vector<8x32xf32> -> vector<8x32xf32>
    %139 = arith.addf %121, %138 : vector<8x32xf32>
    %140 = vector.extract_strided_slice %86 {offsets = [0, 24], sizes = [8, 8], strides = [1, 1]} : vector<8x96xf32> to vector<8x8xf32>
    %141 = vector.extract_strided_slice %86 {offsets = [0, 56], sizes = [8, 8], strides = [1, 1]} : vector<8x96xf32> to vector<8x8xf32>
    %142 = vector.extract_strided_slice %86 {offsets = [0, 88], sizes = [8, 8], strides = [1, 1]} : vector<8x96xf32> to vector<8x8xf32>
    %cst_46 = arith.constant dense<0.000000e+00> : vector<8x8xf32>
    %143 = tpu.matmul %140, %141, %cst_46 {dimension_numbers = #tpu.dot_dimension_numbers<[1], [1], [0], [0], [0, 0, 1, 0], [], []>} : vector<8x8xf32>, vector<8x8xf32>, vector<8x8xf32> -> vector<8x8xf32>
    %cst_47 = arith.constant dense<0xFF800000> : vector<8xf32>
    %144 = vector.multi_reduction <maximumf>, %143, %cst_47 [1] : vector<8x8xf32> to vector<8xf32>
    %145 = vector.shape_cast %144 : vector<8xf32> to vector<8x1xf32>
    %146 = vector.broadcast %145 : vector<8x1xf32> to vector<8x8xf32>
    %147 = arith.subf %143, %146 : vector<8x8xf32>
    %148 = math.exp %147 : vector<8x8xf32>
    %cst_48 = arith.constant dense<0.000000e+00> : vector<8xf32>
    %149 = vector.multi_reduction <add>, %148, %cst_48 [1] : vector<8x8xf32> to vector<8xf32>
    %150 = vector.shape_cast %149 : vector<8xf32> to vector<8x1xf32>
    %151 = tpu.reciprocal %150 {approx = true} : vector<8x1xf32> -> vector<8x1xf32>
    %152 = vector.broadcast %151 : vector<8x1xf32> to vector<8x8xf32>
    %153 = arith.mulf %148, %152 : vector<8x8xf32>
    %cst_49 = arith.constant dense<0.000000e+00> : vector<8x8xf32>
    %154 = tpu.matmul %153, %142, %cst_49 {dimension_numbers = #tpu.dot_dimension_numbers<[1], [0], [0], [1], [0, 0, 1, 1], [], []>} : vector<8x8xf32>, vector<8x8xf32>, vector<8x8xf32> -> vector<8x8xf32>
    %155 = vector.extract_strided_slice %8 {offsets = [24, 0], sizes = [8, 32], strides = [1, 1]} : vector<32x32xf32> to vector<8x32xf32>
    %cst_50 = arith.constant dense<0.000000e+00> : vector<8x32xf32>
    %156 = tpu.matmul %154, %155, %cst_50 {dimension_numbers = #tpu.dot_dimension_numbers<[1], [0], [0], [1], [0, 0, 1, 1], [], []>} : vector<8x8xf32>, vector<8x32xf32>, vector<8x32xf32> -> vector<8x32xf32>
    %157 = arith.addf %139, %156 : vector<8x32xf32>
    %158 = vector.broadcast %10 : vector<1x32xf32> to vector<8x32xf32>
    %159 = arith.addf %157, %158 : vector<8x32xf32>
    %c8 = arith.constant 8 : index
    %c0_51 = arith.constant 0 : index
    %160 = vector.load %arg6[%c8, %c0_51] : memref<16x32xf32, #tpu.memory_space<vmem>>, vector<8x32xf32>
    tpu.vector_store %arg6[%c8, %c0_51], %159 {strides = array<i32>} : memref<16x32xf32, #tpu.memory_space<vmem>>, vector<8x32xf32>,
    return
  }
  func.func @transform_0(%arg0: i32) -> (i32, i32) {
    %c0_i32 = arith.constant 0 : i32
    %c0_i32_0 = arith.constant 0 : i32
    return %arg0, %c0_i32 : i32, i32
  }
  func.func @transform_1(%arg0: i32) -> (i32, i32) {
    %c0_i32 = arith.constant 0 : i32
    %c0_i32_0 = arith.constant 0 : i32
    %c0_i32_1 = arith.constant 0 : i32
    return %c0_i32, %c0_i32_0 : i32, i32
  }
  func.func @transform_2(%arg0: i32) -> (i32, i32) {
    %c0_i32 = arith.constant 0 : i32
    %c0_i32_0 = arith.constant 0 : i32
    %c0_i32_1 = arith.constant 0 : i32
    return %c0_i32, %c0_i32_0 : i32, i32
  }
  func.func @transform_3(%arg0: i32) -> (i32, i32) {
    %c0_i32 = arith.constant 0 : i32
    %c0_i32_0 = arith.constant 0 : i32
    %c0_i32_1 = arith.constant 0 : i32
    return %c0_i32, %c0_i32_0 : i32, i32
  }
  func.func @transform_4(%arg0: i32) -> (i32, i32) {
    %c0_i32 = arith.constant 0 : i32
    %c0_i32_0 = arith.constant 0 : i32
    %c0_i32_1 = arith.constant 0 : i32
    return %c0_i32, %c0_i32_0 : i32, i32
  }
  func.func @transform_5(%arg0: i32) -> (i32, i32) {
    %c0_i32 = arith.constant 0 : i32
    %c0_i32_0 = arith.constant 0 : i32
    return %arg0, %c0_i32 : i32, i32
  }
}

</mosaic_0001>

<bundles_post_ra>
// kernel: attention_forward.1
= control target key start
LH: loop header
LB: loop body
LE: loop exit
PB: predicated region body
PF: predicated region fallthrough
CT: control target
= control target key end

     0   :  { %10 = vsyncpa [#allocation3], 0  ;;  %s2659_s0 = inlined_call_operand.vmem [shape: bf16[16,32], index: 0, kind: input, shape index: {}]   ;;  %s2660_s1 = inlined_call_operand.vmem [shape: bf16[32,96], index: 1, kind: input, shape index: {}]   ;;  %s2661_s2 = inlined_call_operand.vmem [shape: bf16[1,96], index: 2, kind: input, shape index: {}]   ;;  %s2662_s3 = inlined_call_operand.hbm [shape: bf16[32,32], index: 3, kind: input, shape index: {}]   ;;  %s2663_s4 = inlined_call_operand.vmem [shape: bf16[1,32], index: 4, kind: input, shape index: {}]   ;;  %s2664_s5 = inlined_call_operand.hbm [shape: f32[16,32], index: 5, kind: output, shape index: {}]  }
   0x1   :  { %11 = vsyncpa [#allocation4], 0  ;;  %s2373_s18 = smov [#allocation2]  }
   0x2   :  { %s23_s19 = sshll.u32 %s2373_s18, 4  ;;  %s24_s19 = int_to_ptr.vmem [resolvable:$true] %s23_s19 }
   0x3   :  { %s2337_s20 = scalar_lea.vmem %s24_s19, 256  ;;  %p2342_p1 = scmp.lt.s32.totalorder %s24_s19, %s24_s19 }
   0x4   :  { %p2338_p0 = scmp.ne.s32.totalorder %s24_s19, %s2337_s20  ;;  %p2343_p2 = scmp.lt.s32.totalorder %s2337_s20, %s2337_s20 }
   0x6   :  { %p2344_p3 = por %p2343_p2, %p2342_p1 }
   0x8   :  { %p2345_p4 = pnand %p2344_p3, %p2338_p0 }
   0xa   :  { %2348 = shalt.err (!%p2345_p4)
}
   0xb   :  { %s2374_s21 = smov 64   ;;  %s2375_s22 = smov 4  }
   0xc   :  { %29 = dma.hbm_to_vmem [thread:$0]  %s2662_s3, 256, %s24_s19, [#allocation3], %s2374_s21, %s2374_s21, %s2375_s22  }
   0xd   :  { %2369 = dma.done.wait [#allocation3], 256  }
   0xe   :  { %2370 = vsyncadd [#allocation3], 4294967040  ;;  %v2376_v0 = vmov 0.0   ;;  %vm2377_vm0 = vmmov 0   ;;  %v2294_v1 = vld [vmem:[%s2660_s1 + $0x8] sm:$0xff]   ;;  %v2295_v2 = vld [vmem:[%s2660_s1] sm:$0xff]   ;;  %v44_v4 = vlaneseq }
   0xf   :  { %2148 = vmatprep.subr.bf16.mxu0 %v2376_v0  ;;  %2152 = vmatprep.mubr.msk.bf16.mxu0 %vm2377_vm0, %v2376_v0  ;;  %v2296_v3 = vld [vmem:[%s2659_s0] sm:$0xff]   ;;  %vm65_vm1 = vcmask 261120   ;;  %s2378_s0 = smov 96   ;;  %vm123_vm2 = vcmask 64512   ;;  %s2380_s6 = smov 120  }
  0x10   :  { %2156 = vmatprep.subr.mxu1 %v2376_v0  ;;  %2158 = vmatprep.mubr.msk.f32.mxu1 %vm2377_vm0, %v2376_v0  ;;  %v2446_v5 = vshrl.u32 %v44_v4, 7  ;;  %v42_v6 = vld [vmem:[%s2661_s2] sm:$0x1]  ;;  %s2379_s2 = smov 88   ;;  %s2381_s7 = smov 56  }
  0x11   :  { %2149 = vmatpush3.bf16.msra.mxu0 %v2294_v1  ;;  %v43_v7 = vunpack.c.l.bf16 %v42_v6  ;;  %s2382_s8 = smov 80   ;;  %v2489_v41 = vld [vmem:[#allocation2] sm:$0xff]   ;;  %s2383_s9 = smov 112  }
  0x12   :  { %2150 = vmatprep.subr.bf16.mxu0 %v2376_v0  ;;  %v46_v8 = vsub.s32 0, %v2446_v5  ;;  %v2091_v42 = vunpack.c.h.bf16 %v2489_v41  ;;  %v2090_v46 = vunpack.c.l.bf16 %v2489_v41  ;;  %s2384_s10 = smov 48   ;;  %s2385_s11 = smov 72  }
  0x13   :  { %s2386_s12 = smov 104   ;;  %s2387_s13 = smov 40  }
  0x14   :  { %v47_v9 = vrot.slane %v43_v7, %v46_v8 }
  0x15   :  { %2151 = vmatpush3.bf16.msra.mxu0 %v2295_v2  ;;  %v2529_v2 = vld [vmem:[#allocation2 + $0x8] sm:$0xff]  }
  0x16   :  { %2171 = vmatprep.subr.mxu0 %v2376_v0 }
  0x18   :  { %2153 = vmatmul.mubr.msk.bf16.vlgmr.msra.gmra.mxu0 %vm65_vm1, %v2296_v3  ;;  %v2094_v3 = vunpack.c.l.bf16 %v2529_v2 }
  0x19   :  { %2173 = vmatprep.mubr.msk.f32.mxu0 %vm2377_vm0, %v2376_v0 }
  0xd8   :  { %v103_v10 = vpop.f32.mrf.mxu0 }
  0xd9   :  { %v2454_v11 = vadd.f32 %v103_v10, %v47_v9 }
  0xda   :  { %v2154_v12 = vpop.f32.mrf.mxu0 }
  0xdb   :  { %209 = vrot.lane.b32.xlu1 %v2454_v11, %s2374_s21  ;;  %121 = vrot.lane.b32.xlu0 %v2454_v11, %s2378_s0 }
  0xdc   :  { %v106_v13 = vpop.f32.mrf.mxu0 }
  0xdd   :  { %v2460_v14 = vadd.f32 %v106_v13, %v47_v9 }
  0xde   :  { %v2155_v15 = vpop.f32.mrf.mxu0 }
  0xdf   :  { %287 = vrot.lane.b32.xlu1 %v2454_v11, %s2379_s2 }
 0x14d   :  { %v122_v16 = vpop.permute.xlu0 %121  ;;  %v210_v17 = vpop.permute.xlu1 %209 }
 0x14e   :  { %2157 = vmatpush3.xpose.msk.msra.mxu1 %vm123_vm2, %v122_v16 }
 0x14f   :  { %2161 = vmatprep.subr.mxu1 %v2376_v0 }
 0x151   :  { %2159 = vmatmul.mubr.msk.f32.vlgmr.msra.gmra.mxu1 %vm123_vm2, %v2454_v11  ;;  %v288_v26 = vpop.permute.xlu1 %287 }
 0x152   :  { %2162 = vmatpush3.msra.mxu1 %v210_v17  ;;  %2163 = vmatprep.mubr.msk.f32.mxu1 %vm2377_vm0, %v2376_v0 }
 0x153   :  { %2166 = vmatprep.subr.mxu1 %v2376_v0 }
 0x211   :  { %v194_v18 = vpop.f32.mrf.mxu1 }
 0x212   :  { %v198_v19 = vsel %vm123_vm2, %v194_v18, -inf }
 0x213   :  { %199 = vmax.xlane.f32.xlu0 %v198_v19  ;;  %v2160_v20 = vpop.f32.mrf.mxu1 }
 0x29c   :  { %v200_v21 = vpop.xlane.xlu0 %199 }
 0x29d   :  { %v201_v22 = vsub.f32 %v194_v18, %v200_v21 }
 0x29f   :  { %v202_v23 = vmul.f32 1.442695, %v201_v22 }
 0x2a1   :  { %2297 = vpow2.f32 %v202_v23 }
 0x2ae   :  { %v2298_v24 = vpop.eup %2297 }
 0x2af   :  { %v204_v25 = vsel %vm123_vm2, %v2298_v24, 0.0 }
 0x2b0   :  { %205 = vadd.xlane.f32.xlu1 %v204_v25 }
 0x2c1   :  { %285 = vrot.lane.b32.xlu1 %v2454_v11, %s2380_s6 }
 0x339   :  { %v206_v27 = vpop.xlane.xlu1 %205 }
 0x33a   :  { %2299 = vrcp.f32 %v206_v27 }
 0x33d   :  { %v286_v30 = vpop.permute.xlu1 %285 }
 0x347   :  { %v2300_v28 = vpop.eup %2299 }
 0x348   :  { %v208_v29 = vmul.f32 %v2300_v28, %v2298_v24 }
 0x34a   :  { %2164 = vmatmul.mubr.msk.f32.vlgmr.msra.gmra.mxu1 %vm123_vm2, %v208_v29 }
 0x34b   :  { %2167 = vmatpush3.xpose.msk.msra.mxu1 %vm123_vm2, %v288_v26  ;;  %2168 = vmatprep.mubr.msk.f32.mxu1 %vm2377_vm0, %v2376_v0 }
 0x34c   :  { %2176 = vmatprep.subr.mxu1 %v2376_v0 }
 0x34e   :  { %2169 = vmatmul.mubr.msk.f32.vlgmr.msra.gmra.mxu1 %vm123_vm2, %v286_v30 }
 0x34f   :  { %2178 = vmatprep.mubr.msk.f32.mxu1 %vm2377_vm0, %v2376_v0  ;;  %2177 = vmatpush3.msra.mxu1 %v2091_v42 }
 0x350   :  { %2186 = vmatprep.subr.mxu1 %v2376_v0 }
 0x40a   :  { %v281_v31 = vpop.f32.mrf.mxu1 }
 0x40c   :  { %v2165_v32 = vpop.f32.mrf.mxu1 }
 0x40e   :  { %v359_v33 = vpop.f32.mrf.mxu1 }
 0x40f   :  { %v363_v34 = vsel %vm123_vm2, %v359_v33, -inf }
 0x410   :  { %364 = vmax.xlane.f32.xlu1 %v363_v34  ;;  %v2170_v35 = vpop.f32.mrf.mxu1 }
 0x499   :  { %v365_v36 = vpop.xlane.xlu1 %364 }
 0x49a   :  { %v366_v37 = vsub.f32 %v359_v33, %v365_v36  ;;  %v2095_v33 = vunpack.c.h.bf16 %v2529_v2 }
 0x49c   :  { %v367_v38 = vmul.f32 1.442695, %v366_v37 }
 0x49e   :  { %2301 = vpow2.f32 %v367_v38 }
 0x4ab   :  { %v2302_v39 = vpop.eup %2301 }
 0x4ac   :  { %v369_v40 = vsel %vm123_vm2, %v2302_v39, 0.0 }
 0x4ad   :  { %370 = vadd.xlane.f32.xlu0 %v369_v40 }
 0x4c3   :  { %374 = vrot.lane.b32.xlu0 %v2454_v11, %s2381_s7 }
 0x4c7   :  { %598 = vrot.lane.b32.xlu0 %v2454_v11, %s2382_s8 }
 0x4cb   :  { %596 = vrot.lane.b32.xlu0 %v2454_v11, %s2383_s9 }
 0x536   :  { %v371_v43 = vpop.xlane.xlu0 %370 }
 0x537   :  { %2303 = vrcp.f32 %v371_v43 }
 0x53a   :  { %v375_v44 = vpop.permute.xlu0 %374 }
 0x53b   :  { %2172 = vmatpush3.msra.mxu0 %v375_v44 }
 0x53c   :  { %2181 = vmatprep.subr.mxu0 %v2376_v0 }
 0x53e   :  { %v599_v48 = vpop.permute.xlu0 %598 }
 0x542   :  { %v597_v51 = vpop.permute.xlu0 %596 }
 0x544   :  { %v2304_v45 = vpop.eup %2303 }
 0x545   :  { %v373_v47 = vmul.f32 %v2304_v45, %v2302_v39 }
 0x547   :  { %2174 = vmatmul.mubr.msk.f32.vlgmr.msra.gmra.mxu0 %vm123_vm2, %v373_v47 }
 0x548   :  { %2182 = vmatpush3.msra.mxu0 %v2090_v46  ;;  %2183 = vmatprep.mubr.msk.f32.mxu0 %vm2377_vm0, %v2376_v0 }
 0x549   :  { %2191 = vmatprep.subr.mxu0 %v2376_v0 }
 0x54b   :  { %2184 = vmatmul.mubr.msk.f32.vlgmr.msra.gmra.mxu0 %vm123_vm2, %v281_v31 }
 0x54c   :  { %2193 = vmatprep.mubr.msk.f32.mxu0 %vm2377_vm0, %v2376_v0 }
 0x607   :  { %v446_v49 = vpop.f32.mrf.mxu0 }
 0x608   :  { %2179 = vmatmul.mubr.msk.f32.vlgmr.msra.gmra.mxu1 %vm123_vm2, %v446_v49 }
 0x609   :  { %2187 = vmatpush3.xpose.msk.msra.mxu1 %vm123_vm2, %v599_v48  ;;  %v2175_v50 = vpop.f32.mrf.mxu0  ;;  %2188 = vmatprep.mubr.msk.f32.mxu1 %vm2377_vm0, %v2376_v0 }
 0x60a   :  { %2196 = vmatprep.subr.mxu1 %v2376_v0 }
 0x60b   :  { %v2513_v52 = vpop.f32.mrf.mxu0 }
 0x60c   :  { %2189 = vmatmul.mubr.msk.f32.vlgmr.msra.gmra.mxu1 %vm123_vm2, %v597_v51 }
 0x60d   :  { %v2185_v53 = vpop.f32.mrf.mxu0  ;;  %2198 = vmatprep.mubr.msk.f32.mxu1 %vm2377_vm0, %v2376_v0  ;;  %2197 = vmatpush3.msra.mxu1 %v2094_v3 }
 0x60e   :  { %2206 = vmatprep.subr.mxu1 %v2376_v0 }
 0x6c8   :  { %v519_v54 = vpop.f32.mrf.mxu1 }
 0x6c9   :  { %v593_v23 = vadd.f32 %v2513_v52, %v519_v54  ;;  %v118_v54 = vld [vmem:[%s2663_s4] sm:$0x1]  ;;  %s2388_s4 = smov [#allocation5]  }
 0x6ca   :  { %v2180_v55 = vpop.f32.mrf.mxu1  ;;  %s2040_s16 = sshll.u32 %s2388_s4, 4  ;;  %s2041_s16 = int_to_ptr.vmem [resolvable:$true] %s2040_s16 }
 0x6cb   :  { %v119_v55 = vunpack.c.l.bf16 %v118_v54  ;;  %s2349_s17 = scalar_lea.vmem %s2041_s16, 256  ;;  %p2354_p6 = scmp.lt.s32.totalorder %s2041_s16, %s2041_s16 }
 0x6cc   :  { %v670_v56 = vpop.f32.mrf.mxu1  ;;  %p2350_p5 = scmp.ne.s32.totalorder %s2041_s16, %s2349_s17  ;;  %p2355_p7 = scmp.lt.s32.totalorder %s2349_s17, %s2349_s17 }
 0x6cd   :  { %v674_v57 = vsel %vm123_vm2, %v670_v56, -inf }
 0x6ce   :  { %675 = vmax.xlane.f32.xlu1 %v674_v57  ;;  %v2190_v58 = vpop.f32.mrf.mxu1  ;;  %p2356_p8 = por %p2355_p7, %p2354_p6 }
 0x6d0   :  { %p2357_p9 = pnand %p2356_p8, %p2350_p5 }
 0x6df   :  { %685 = vrot.lane.b32.xlu1 %v2454_v11, %s2384_s10 }
 0x6e3   :  { %837 = vrot.lane.b32.xlu1 %v2454_v11, %s2385_s11 }
 0x6e7   :  { %835 = vrot.lane.b32.xlu1 %v2454_v11, %s2386_s12 }
 0x757   :  { %v676_v59 = vpop.xlane.xlu1 %675 }
 0x758   :  { %v677_v60 = vsub.f32 %v670_v56, %v676_v59  ;;  %v2593_v56 = vrot.slane %v119_v55, %v46_v8 }
 0x75a   :  { %v678_v61 = vmul.f32 1.442695, %v677_v60 }
 0x75b   :  { %v686_v62 = vpop.permute.xlu1 %685 }
 0x75c   :  { %2305 = vpow2.f32 %v678_v61  ;;  %2192 = vmatpush3.msra.mxu0 %v686_v62 }
 0x75d   :  { %2201 = vmatprep.subr.mxu0 %v2376_v0 }
 0x75f   :  { %v838_v7 = vpop.permute.xlu1 %837 }
 0x763   :  { %v836_v10 = vpop.permute.xlu1 %835 }
 0x769   :  { %v2306_v63 = vpop.eup %2305 }
 0x76a   :  { %v680_v1 = vsel %vm123_vm2, %v2306_v63, 0.0 }
 0x76b   :  { %681 = vadd.xlane.f32.xlu0 %v680_v1 }
 0x781   :  { %924 = vrot.lane.b32.xlu0 %v2454_v11, %s2387_s13 }
 0x7f4   :  { %v682_v4 = vpop.xlane.xlu0 %681 }
 0x7f5   :  { %2307 = vrcp.f32 %v682_v4 }
 0x7f8   :  { %v925_v12 = vpop.permute.xlu0 %924 }
 0x802   :  { %v2308_v6 = vpop.eup %2307 }
 0x803   :  { %v684_v9 = vmul.f32 %v2308_v6, %v2306_v63 }
 0x805   :  { %2194 = vmatmul.mubr.msk.f32.vlgmr.msra.gmra.mxu0 %vm123_vm2, %v684_v9 }
 0x806   :  { %2202 = vmatpush3.xpose.msk.msra.mxu0 %vm123_vm2, %v838_v7  ;;  %2203 = vmatprep.mubr.msk.f32.mxu0 %vm2377_vm0, %v2376_v0 }
 0x807   :  { %2211 = vmatprep.subr.mxu0 %v2376_v0 }
 0x809   :  { %2204 = vmatmul.mubr.msk.f32.vlgmr.msra.gmra.mxu0 %vm123_vm2, %v836_v10 }
 0x80a   :  { %2213 = vmatprep.mubr.msk.f32.mxu0 %vm2377_vm0, %v2376_v0  ;;  %2212 = vmatpush3.msra.mxu0 %v2095_v33 }
 0x80b   :  { %2221 = vmatprep.subr.mxu0 %v2376_v0 }
 0x8c5   :  { %v757_v11 = vpop.f32.mrf.mxu0 }
 0x8c6   :  { %2199 = vmatmul.mubr.msk.f32.vlgmr.msra.gmra.mxu1 %vm123_vm2, %v757_v11 }
 0x8c7   :  { %2207 = vmatpush3.msra.mxu1 %v925_v12  ;;  %v2195_v13 = vpop.f32.mrf.mxu0  ;;  %2208 = vmatprep.mubr.msk.f32.mxu1 %vm2377_vm0, %v2376_v0 }
 0x8c8   :  { %2216 = vmatprep.subr.mxu1 %v2376_v0 }
 0x8c9   :  { %v909_v15 = vpop.f32.mrf.mxu0 }
 0x8ca   :  { %v913_v16 = vsel %vm123_vm2, %v909_v15, -inf }
 0x8cb   :  { %914 = vmax.xlane.f32.xlu1 %v913_v16  ;;  %v2205_v17 = vpop.f32.mrf.mxu0 }
 0x8dc   :  { %1244 = vrot.lane.b32.xlu1 %v2460_v14, %s2380_s6 }
 0x954   :  { %v915_v18 = vpop.xlane.xlu1 %914 }
 0x955   :  { %v916_v19 = vsub.f32 %v909_v15, %v915_v18 }
 0x957   :  { %v917_v20 = vmul.f32 1.442695, %v916_v19 }
 0x958   :  { %v1245_v32 = vpop.permute.xlu1 %1244 }
 0x959   :  { %2309 = vpow2.f32 %v917_v20 }
 0x966   :  { %v2310_v21 = vpop.eup %2309 }
 0x967   :  { %v919_v22 = vsel %vm123_vm2, %v2310_v21, 0.0 }
 0x968   :  { %920 = vadd.xlane.f32.xlu0 %v919_v22 }
 0x97e   :  { %1081 = vrot.lane.b32.xlu0 %v2460_v14, %s2378_s0 }
 0x982   :  { %1246 = vrot.lane.b32.xlu0 %v2460_v14, %s2379_s2 }
 0x986   :  { %v830_v24 = vpop.f32.mrf.mxu1 }
 0x987   :  { %v834_v25 = vadd.f32 %v830_v24, %v593_v23 }
 0x988   :  { %v2200_v26 = vpop.f32.mrf.mxu1 }
 0x9f1   :  { %v921_v27 = vpop.xlane.xlu0 %920 }
 0x9f2   :  { %2311 = vrcp.f32 %v921_v27 }
 0x9f5   :  { %v1082_v29 = vpop.permute.xlu0 %1081 }
 0x9f9   :  { %v1247_v31 = vpop.permute.xlu0 %1246 }
 0x9ff   :  { %v2312_v28 = vpop.eup %2311 }
 0xa00   :  { %v923_v30 = vmul.f32 %v2312_v28, %v2310_v21 }
 0xa02   :  { %2209 = vmatmul.mubr.msk.f32.vlgmr.msra.gmra.mxu1 %vm123_vm2, %v923_v30 }
 0xa03   :  { %2217 = vmatpush3.xpose.msk.msra.mxu1 %vm123_vm2, %v1082_v29  ;;  %2218 = vmatprep.mubr.msk.f32.mxu1 %vm2377_vm0, %v2376_v0 }
 0xa04   :  { %2226 = vmatprep.subr.mxu1 %v2376_v0 }
 0xa06   :  { %2219 = vmatmul.mubr.msk.f32.vlgmr.msra.gmra.mxu1 %vm123_vm2, %v2460_v14 }
 0xa07   :  { %2227 = vmatpush3.xpose.msk.msra.mxu1 %vm123_vm2, %v1247_v31  ;;  %2228 = vmatprep.mubr.msk.f32.mxu1 %vm2377_vm0, %v2376_v0 }
 0xa08   :  { %2236 = vmatprep.subr.mxu1 %v2376_v0 }
 0xa0a   :  { %2229 = vmatmul.mubr.msk.f32.vlgmr.msra.gmra.mxu1 %vm123_vm2, %v1245_v32 }
 0xa0b   :  { %2237 = vmatpush3.msra.mxu1 %v2091_v42  ;;  %2238 = vmatprep.mubr.msk.f32.mxu1 %vm2377_vm0, %v2376_v0 }
 0xa0c   :  { %2246 = vmatprep.subr.mxu1 %v2376_v0 }
 0xac2   :  { %v996_v34 = vpop.f32.mrf.mxu1 }
 0xac3   :  { %2214 = vmatmul.mubr.msk.f32.vlgmr.msra.gmra.mxu0 %vm123_vm2, %v996_v34 }
 0xac4   :  { %v2210_v35 = vpop.f32.mrf.mxu1  ;;  %2223 = vmatprep.mubr.msk.f32.mxu0 %vm2377_vm0, %v2376_v0 }
 0xac6   :  { %v1153_v36 = vpop.f32.mrf.mxu1 }
 0xac7   :  { %v1157_v37 = vsel %vm123_vm2, %v1153_v36, -inf }
 0xac8   :  { %1158 = vmax.xlane.f32.xlu0 %v1157_v37  ;;  %v2220_v38 = vpop.f32.mrf.mxu1 }
 0xaca   :  { %v1318_v39 = vpop.f32.mrf.mxu1 }
 0xacb   :  { %v1322_v40 = vsel %vm123_vm2, %v1318_v39, -inf }
 0xacc   :  { %1323 = vmax.xlane.f32.xlu1 %v1322_v40  ;;  %v2230_v42 = vpop.f32.mrf.mxu1 }
 0xadd   :  { %1333 = vrot.lane.b32.xlu1 %v2460_v14, %s2381_s7 }
 0xb51   :  { %v1159_v43 = vpop.xlane.xlu0 %1158 }
 0xb52   :  { %v1160_v44 = vsub.f32 %v1153_v36, %v1159_v43 }
 0xb54   :  { %v1161_v45 = vmul.f32 1.442695, %v1160_v44 }
 0xb55   :  { %v1324_v47 = vpop.xlane.xlu1 %1323 }
 0xb56   :  { %2313 = vpow2.f32 %v1161_v45  ;;  %v1325_v48 = vsub.f32 %v1318_v39, %v1324_v47 }
 0xb58   :  { %v1326_v49 = vmul.f32 1.442695, %v1325_v48 }
 0xb59   :  { %v1334_v1 = vpop.permute.xlu1 %1333 }
 0xb5a   :  { %2315 = vpow2.f32 %v1326_v49 }
 0xb63   :  { %v2314_v50 = vpop.eup %2313 }
 0xb64   :  { %v1163_v51 = vsel %vm123_vm2, %v2314_v50, 0.0 }
 0xb65   :  { %1164 = vadd.xlane.f32.xlu0 %v1163_v51 }
 0xb67   :  { %v2316_v52 = vpop.eup %2315 }
 0xb68   :  { %v1328_v53 = vsel %vm123_vm2, %v2316_v52, 0.0 }
 0xb69   :  { %1329 = vadd.xlane.f32.xlu0 %v1328_v53 }
 0xb7f   :  { %1168 = vrot.lane.b32.xlu0 %v2460_v14, %s2374_s21 }
 0xb83   :  { %1557 = vrot.lane.b32.xlu0 %v2460_v14, %s2382_s8  ;;  %v1069_v57 = vpop.f32.mrf.mxu0 }
 0xb84   :  { %v1073_v58 = vadd.f32 %v1069_v57, %v834_v25 }
 0xb85   :  { %v2215_v59 = vpop.f32.mrf.mxu0 }
 0xb86   :  { %v1078_v60 = vadd.f32 %v2593_v56, %v1073_v58 }
 0xb87   :  { %1555 = vrot.lane.b32.xlu0 %v2460_v14, %s2383_s9 }
 0xb88   :  { %1079 = vst.msk [vmem:[#allocation5] sm:$0xff] %vm65_vm1, %v1078_v60 }
 0xbee   :  { %v1165_v61 = vpop.xlane.xlu0 %1164 }
 0xbef   :  { %2317 = vrcp.f32 %v1165_v61 }
 0xbf2   :  { %v1330_v62 = vpop.xlane.xlu0 %1329 }
 0xbf3   :  { %2319 = vrcp.f32 %v1330_v62 }
 0xbf6   :  { %v1169_v5 = vpop.permute.xlu0 %1168 }
 0xbf7   :  { %2222 = vmatpush3.msra.mxu0 %v1169_v5 }
 0xbf8   :  { %2231 = vmatprep.subr.mxu0 %v2376_v0 }
 0xbfa   :  { %v1558_v9 = vpop.permute.xlu0 %1557 }
 0xbfc   :  { %v2318_v8 = vpop.eup %2317 }
 0xbfd   :  { %v1167_v63 = vmul.f32 %v2318_v8, %v2314_v50 }
 0xbff   :  { %2224 = vmatmul.mubr.msk.f32.vlgmr.msra.gmra.mxu0 %vm123_vm2, %v1167_v63 }
 0xc00   :  { %v2320_v4 = vpop.eup %2319  ;;  %2232 = vmatpush3.msra.mxu0 %v1334_v1  ;;  %2233 = vmatprep.mubr.msk.f32.mxu0 %vm2377_vm0, %v2376_v0 }
 0xc01   :  { %v1332_v6 = vmul.f32 %v2320_v4, %v2316_v52  ;;  %2241 = vmatprep.subr.mxu0 %v2376_v0 }
 0xc03   :  { %2234 = vmatmul.mubr.msk.f32.vlgmr.msra.gmra.mxu0 %vm123_vm2, %v1332_v6 }
 0xc04   :  { %2242 = vmatpush3.msra.mxu0 %v2090_v46  ;;  %2243 = vmatprep.mubr.msk.f32.mxu0 %vm2377_vm0, %v2376_v0  ;;  %v1556_v46 = vpop.permute.xlu0 %1555 }
 0xc05   :  { %2251 = vmatprep.subr.mxu0 %v2376_v0 }
 0xcbf   :  { %v1240_v7 = vpop.f32.mrf.mxu0 }
 0xcc0   :  { %2244 = vmatmul.mubr.msk.f32.vlgmr.msra.gmra.mxu0 %vm123_vm2, %v1240_v7 }
 0xcc1   :  { %v2225_v10 = vpop.f32.mrf.mxu0  ;;  %2253 = vmatprep.mubr.msk.f32.mxu0 %vm2377_vm0, %v2376_v0 }
 0xcc3   :  { %v1405_v11 = vpop.f32.mrf.mxu0 }
 0xcc4   :  { %2239 = vmatmul.mubr.msk.f32.vlgmr.msra.gmra.mxu1 %vm123_vm2, %v1405_v11 }
 0xcc5   :  { %2247 = vmatpush3.xpose.msk.msra.mxu1 %vm123_vm2, %v1558_v9  ;;  %v2235_v41 = vpop.f32.mrf.mxu0  ;;  %2248 = vmatprep.mubr.msk.f32.mxu1 %vm2377_vm0, %v2376_v0 }
 0xcc6   :  { %2256 = vmatprep.subr.mxu1 %v2376_v0 }
 0xcc8   :  { %2249 = vmatmul.mubr.msk.f32.vlgmr.msra.gmra.mxu1 %vm123_vm2, %v1556_v46 }
 0xcc9   :  { %2257 = vmatpush3.msra.mxu1 %v2094_v3  ;;  %2258 = vmatprep.mubr.msk.f32.mxu1 %vm2377_vm0, %v2376_v0 }
 0xcca   :  { %2266 = vmatprep.subr.mxu1 %v2376_v0 }
 0xd80   :  { %v1551_v12 = vpop.f32.mrf.mxu0 }
 0xd82   :  { %v2245_v13 = vpop.f32.mrf.mxu0 }
 0xd84   :  { %v1478_v15 = vpop.f32.mrf.mxu1 }
 0xd85   :  { %v1552_v16 = vadd.f32 %v1551_v12, %v1478_v15 }
 0xd86   :  { %v2240_v17 = vpop.f32.mrf.mxu1 }
 0xd88   :  { %v1629_v18 = vpop.f32.mrf.mxu1 }
 0xd89   :  { %v1633_v19 = vsel %vm123_vm2, %v1629_v18, -inf }
 0xd8a   :  { %1634 = vmax.xlane.f32.xlu1 %v1633_v19  ;;  %v2250_v20 = vpop.f32.mrf.mxu1 }
 0xd9b   :  { %1796 = vrot.lane.b32.xlu1 %v2460_v14, %s2385_s11 }
 0xd9f   :  { %1794 = vrot.lane.b32.xlu1 %v2460_v14, %s2386_s12 }
 0xe13   :  { %v1635_v3 = vpop.xlane.xlu1 %1634 }
 0xe14   :  { %v1636_v21 = vsub.f32 %v1629_v18, %v1635_v3 }
 0xe16   :  { %v1637_v22 = vmul.f32 1.442695, %v1636_v21 }
 0xe17   :  { %v1797_v28 = vpop.permute.xlu1 %1796 }
 0xe18   :  { %2321 = vpow2.f32 %v1637_v22 }
 0xe1b   :  { %v1795_v30 = vpop.permute.xlu1 %1794 }
 0xe25   :  { %v2322_v23 = vpop.eup %2321 }
 0xe26   :  { %v1639_v24 = vsel %vm123_vm2, %v2322_v23, 0.0 }
 0xe27   :  { %1640 = vadd.xlane.f32.xlu0 %v1639_v24 }
 0xe3d   :  { %1644 = vrot.lane.b32.xlu0 %v2460_v14, %s2384_s10 }
 0xeb0   :  { %v1641_v25 = vpop.xlane.xlu0 %1640 }
 0xeb1   :  { %2323 = vrcp.f32 %v1641_v25 }
 0xeb4   :  { %v1645_v26 = vpop.permute.xlu0 %1644 }
 0xeb5   :  { %2252 = vmatpush3.msra.mxu0 %v1645_v26 }
 0xeb6   :  { %2261 = vmatprep.subr.mxu0 %v2376_v0 }
 0xebe   :  { %v2324_v27 = vpop.eup %2323 }
 0xebf   :  { %v1643_v29 = vmul.f32 %v2324_v27, %v2322_v23 }
 0xec1   :  { %2254 = vmatmul.mubr.msk.f32.vlgmr.msra.gmra.mxu0 %vm123_vm2, %v1643_v29 }
 0xec2   :  { %2262 = vmatpush3.xpose.msk.msra.mxu0 %vm123_vm2, %v1797_v28  ;;  %2263 = vmatprep.mubr.msk.f32.mxu0 %vm2377_vm0, %v2376_v0 }
 0xec3   :  { %2271 = vmatprep.subr.mxu0 %v2376_v0 }
 0xec5   :  { %2264 = vmatmul.mubr.msk.f32.vlgmr.msra.gmra.mxu0 %vm123_vm2, %v1795_v30 }
 0xec6   :  { %2272 = vmatpush3.msra.mxu0 %v2095_v33  ;;  %2273 = vmatprep.mubr.msk.f32.mxu0 %vm2377_vm0, %v2376_v0 }
 0xf81   :  { %v1716_v31 = vpop.f32.mrf.mxu0 }
 0xf82   :  { %2259 = vmatmul.mubr.msk.f32.vlgmr.msra.gmra.mxu1 %vm123_vm2, %v1716_v31 }
 0xf83   :  { %v2255_v32 = vpop.f32.mrf.mxu0  ;;  %2268 = vmatprep.mubr.msk.f32.mxu1 %vm2377_vm0, %v2376_v0 }
 0xf85   :  { %v1868_v34 = vpop.f32.mrf.mxu0 }
 0xf86   :  { %v1872_v35 = vsel %vm123_vm2, %v1868_v34, -inf }
 0xf87   :  { %1873 = vmax.xlane.f32.xlu0 %v1872_v35  ;;  %v2265_v36 = vpop.f32.mrf.mxu0 }
 0xf9d   :  { %1883 = vrot.lane.b32.xlu0 %v2460_v14, %s2387_s13 }
0x1010   :  { %v1874_v2 = vpop.xlane.xlu0 %1873 }
0x1011   :  { %v1875_v33 = vsub.f32 %v1868_v34, %v1874_v2 }
0x1013   :  { %v1876_v37 = vmul.f32 1.442695, %v1875_v33 }
0x1014   :  { %v1884_v38 = vpop.permute.xlu0 %1883 }
0x1015   :  { %2325 = vpow2.f32 %v1876_v37  ;;  %2267 = vmatpush3.msra.mxu1 %v1884_v38 }
0x1022   :  { %v2326_v39 = vpop.eup %2325 }
0x1023   :  { %v1878_v40 = vsel %vm123_vm2, %v2326_v39, 0.0 }
0x1024   :  { %1879 = vadd.xlane.f32.xlu1 %v1878_v40 }
0x1042   :  { %v1789_v42 = vpop.f32.mrf.mxu1 }
0x1043   :  { %v1793_v0 = vadd.f32 %v1789_v42, %v1552_v16 }
0x1044   :  { %v2260_v43 = vpop.f32.mrf.mxu1 }
0x10ad   :  { %v1880_v44 = vpop.xlane.xlu1 %1879 }
0x10ae   :  { %2327 = vrcp.f32 %v1880_v44 }
0x10bb   :  { %v2328_v45 = vpop.eup %2327 }
0x10bc   :  { %v1882_v47 = vmul.f32 %v2328_v45, %v2326_v39 }
0x10be   :  { %2269 = vmatmul.mubr.msk.f32.vlgmr.msra.gmra.mxu1 %vm123_vm2, %v1882_v47 }
0x117e   :  { %v1955_v14 = vpop.f32.mrf.mxu1 }
0x117f   :  { %2274 = vmatmul.mubr.msk.f32.vlgmr.msra.gmra.mxu0 %vm123_vm2, %v1955_v14 }
0x1180   :  { %v2270_v48 = vpop.f32.mrf.mxu1 }
0x123f   :  { %v2028_v49 = vpop.f32.mrf.mxu0 }
0x1240   :  { %v2032_v50 = vadd.f32 %v2028_v49, %v1793_v0 }
0x1241   :  { %v2275_v51 = vpop.f32.mrf.mxu0 }
0x1242   :  { %v2033_v52 = vadd.f32 %v2032_v50, %v2593_v56 }
0x1244   :  { %2034 = vst.msk [vmem:[#allocation5 + $0x8] sm:$0xff] %vm65_vm1, %v2033_v52 }
0x1245   :  { %2360 = shalt.err (!%p2357_p9)
}
0x1246   :  { %s2389_s18 = smov 128   ;;  %s2390_s19 = smov 8  }
0x1247   :  { %2046 = dma.vmem_to_hbm [thread:$0]  %s2041_s16, 256, %s2664_s5, [#allocation4], %s2389_s18, %s2389_s18, %s2390_s19  }
0x1248   :  { %2371 = dma.done.wait [#allocation4], 256  }
0x1249   :  { %2372 = vsyncadd [#allocation4], 4294967040 }
0x124a   :  { %2050 = vsyncpa [#allocation3], 1 }
0x124b   :  { %2051 = vsyncpa [#allocation4], 1 }

</bundles_post_ra>
